<compile_context>
chip_gen: v5e
topology: v5e:2x2
jax: 0.10.0
libtpu: 0.0.40
codegen_flags: <defaults>
</compile_context>

<pallas_src>
import functools

import jax
import jax.numpy as jnp
from jax.experimental import pallas as pl
from jax.experimental.pallas import tpu as pltpu


def _v_network_kernel(obs_ref, w1_ref, b1_ref, w2_ref, b2_ref, w3_ref, b3_ref,
                      out_ref):
    """Fused 3-layer MLP in batch-on-lanes layout.

    obs_ref: (obs_dim, tb)  activation dtype (f32 or bf16)
    w1_ref : (64, obs_dim)  activation dtype   (PyTorch (out,in) layout)
    b1_ref : (64, 1)        activation dtype
    w2_ref : (64, 64)       activation dtype
    b2_ref : (64, 1)        activation dtype
    w3_ref : (64, 1)        f32                (PyTorch fc3 weight, transposed)
    b3_ref : (1,)           f32, SMEM scalar
    out_ref: (1, tb)        f32 (lane-dense)
    """
    x = obs_ref[...]                              # (obs_dim, tb)
    w1 = w1_ref[...]                              # (64, obs_dim)
    obs_dim = x.shape[0]

    # ---- fc1: K=obs_dim(=3) -> 3 broadcast FMAs on the VPU ------------------
    # w1 column (64,1) broadcasts over lanes; obs row (1,tb) is a cheap
    # sublane-stride-0 broadcast.  Avoids any MXU/relayout work for K=3.
    h1 = w1[:, 0:1] * x[0:1, :]                   # (64, tb)
    for k in range(1, obs_dim):                   # static, tiny unroll
        h1 = h1 + w1[:, k:k + 1] * x[k:k + 1, :]
    h1 = jnp.tanh(h1 + b1_ref[...])               # EUP tanh, full-lane vregs

    # ---- fc2: the one real matmul, (64,64) @ (64,tb) on the MXU -------------
    h2 = jnp.dot(w2_ref[...], h1, preferred_element_type=jnp.float32)
    h2 = jnp.tanh(h2.astype(h1.dtype) + b2_ref[...])   # tanh in act dtype

    # ---- fc3: N=1 -> sublane-weighted reduce, lane-dense (1, tb) output -----
    v = jnp.sum(h2.astype(jnp.float32) * w3_ref[...], axis=0, keepdims=True)
    out_ref[...] = v + b3_ref[0]                  # b3 read from SMEM (scalar slot)


@functools.partial(jax.jit, static_argnames=("tile_b", "use_bf16"))
def v_network_forward(obs, params, tile_b=4096, use_bf16=False):
    """obs: (B, obs_dim) f32.  params: PyTorch-layout weights/biases (see init)."""
    B, obs_dim = obs.shape
    h = params["w1"].shape[0]                     # hidden = 64

    act_dtype = jnp.bfloat16 if use_bf16 else jnp.float32

    # Layout plumbing (cheap, outside the kernel, done once per call):
    # obs -> (obs_dim, B) so the batch sits on the lane axis inside the kernel.
    obs_t = obs.T.astype(act_dtype)               # (obs_dim, B)
    w1 = params["w1"].astype(act_dtype)           # (64, obs_dim)
    b1 = params["b1"].reshape(h, 1).astype(act_dtype)
    w2 = params["w2"].astype(act_dtype)           # (64, 64) -- cast ONCE, not per step
    b2 = params["b2"].reshape(h, 1).astype(act_dtype)
    w3 = params["w3"].reshape(h, 1).astype(jnp.float32)   # fc3 weight as (64,1) column
    b3 = params["b3"].reshape(1).astype(jnp.float32)       # SMEM scalar

    # Batch tile on the LANE axis: large (amortizes ~0.35us/step overhead),
    # multiple of 128 when tiling, or the exact batch when it fits one block.
    if B <= tile_b:
        tb = B                                    # full-extent block (any B allowed)
        grid = (1,)
    else:
        tb = max(128, (tile_b // 128) * 128)      # lane-axis blocks must be %128
        grid = (pl.cdiv(B, tb),)                  # ragged last block -> masked writeback

    out = pl.pallas_call(
        _v_network_kernel,
        out_shape=jax.ShapeDtypeStruct((1, B), jnp.float32),   # exact B, no pad/slice
        grid_spec=pl.GridSpec(
            grid=grid,
            in_specs=[
                pl.BlockSpec((obs_dim, tb), lambda i: (0, i)),  # obs^T, batch-tiled
                pl.BlockSpec((h, obs_dim), lambda i: (0, 0)),   # w1 (resident)
                pl.BlockSpec((h, 1), lambda i: (0, 0)),         # b1
                pl.BlockSpec((h, h), lambda i: (0, 0)),         # w2
                pl.BlockSpec((h, 1), lambda i: (0, 0)),         # b2
                pl.BlockSpec((h, 1), lambda i: (0, 0)),         # w3 column
                pl.BlockSpec(memory_space=pltpu.MemorySpace.SMEM),  # b3 scalar
            ],
            out_specs=pl.BlockSpec((1, tb), lambda i: (0, i)),  # lane-dense output row
        ),
        compiler_params=pltpu.CompilerParams(
            dimension_semantics=("parallel",)),   # megacore-shardable when grid >= 2
    )(obs_t, w1, b1, w2, b2, w3, b3)

    # (1, B) -> (B, 1): contiguous reshape, no data movement.
    return out.reshape(B, 1)


def init_v_network_params(key, obs_dim, hidden=64):
    """nn.Linear-style init, PyTorch layout: W (out,in), b (out,)."""
    keys = jax.random.split(key, 6)

    def linear(kw, kb, fan_in, fan_out):
        bound = 1.0 / jnp.sqrt(jnp.float32(fan_in))
        w = jax.random.uniform(kw, (fan_out, fan_in), jnp.float32,
                               minval=-bound, maxval=bound)
        b = jax.random.uniform(kb, (fan_out,), jnp.float32,
                               minval=-bound, maxval=bound)
        return w, b

    w1, b1 = linear(keys[0], keys[1], obs_dim, hidden)
    w2, b2 = linear(keys[2], keys[3], hidden, hidden)
    w3, b3 = linear(keys[4], keys[5], hidden, 1)
    return {"w1": w1, "b1": b1, "w2": w2, "b2": b2, "w3": w3, "b3": b3}


def v_network_ref(obs, params):
    """Pure-JAX reference matching the PyTorch forward (W in (out,in) layout)."""
    y = jnp.tanh(obs @ params["w1"].T + params["b1"])
    y = jnp.tanh(y @ params["w2"].T + params["b2"])
    return y @ params["w3"].T + params["b3"]


if __name__ == "__main__":
    key = jax.random.PRNGKey(0)
    k_obs_a, k_obs_b, k_params = jax.random.split(key, 3)

    obs_dim = 3                                   # Pendulum-v1 observation dim
    params = init_v_network_params(k_params, obs_dim)

    # Case 1: tiny batch, not a multiple of 8/128 -> single full-extent block.
    obs_a = jax.random.normal(k_obs_a, (37, obs_dim), dtype=jnp.float32)
    ref_a = v_network_ref(obs_a, params)
    out_a = jax.block_until_ready(v_network_forward(obs_a, params))
    assert out_a.shape == (37, 1)
    assert jnp.allclose(out_a, ref_a, atol=1e-5, rtol=1e-5), "f32 single-block mismatch"

    # Case 2: multi-block grid with a ragged last block (small tile to exercise it).
    obs_b = jax.random.normal(k_obs_b, (300, obs_dim), dtype=jnp.float32)
    ref_b = v_network_ref(obs_b, params)
    out_b = jax.block_until_ready(v_network_forward(obs_b, params, tile_b=128))
    assert out_b.shape == (300, 1)
    assert jnp.allclose(out_b, ref_b, atol=1e-5, rtol=1e-5), "f32 ragged-grid mismatch"

    # Case 3: optional bf16 activation path (intended for v6e/v7x); f32 accumulate
    # in the MXU and f32 fc3/output, so error stays small -> loose tolerance.
    out_bf16 = jax.block_until_ready(
        v_network_forward(obs_a, params, use_bf16=True))
    assert out_bf16.shape == (37, 1)
    assert jnp.allclose(out_bf16, ref_a, atol=5e-2, rtol=5e-2), "bf16 mismatch"

    print("KERNEL_OK")
</pallas_src>

<mosaic_0001>
module attributes {stable_mosaic.version = 11 : i64} {
  func.func @_v_network_kernel(%arg0: i32, %arg1: memref<3x37xf32, #tpu.memory_space<vmem>>, %arg2: memref<64x3xf32, #tpu.memory_space<vmem>>, %arg3: memref<64x1xf32, #tpu.memory_space<vmem>>, %arg4: memref<64x64xf32, #tpu.memory_space<vmem>>, %arg5: memref<64x1xf32, #tpu.memory_space<vmem>>, %arg6: memref<64x1xf32, #tpu.memory_space<vmem>>, %arg7: memref<1xf32, #tpu.memory_space<smem>>, %arg8: memref<1x37xf32, #tpu.memory_space<vmem>>) attributes {dimension_semantics = [#tpu.dimension_semantics<parallel>], iteration_bounds = array<i64: 1>, scalar_prefetch = 0 : i64, scratch_operands = 0 : i64, tpu.core_type = #tpu.core_type<tc>, window_params = [{transform_indices = @transform_0, window_bounds = array<i64: 3, 37>}, {pipeline_mode = #tpu.pipeline_mode<synchronous>, transform_indices = @transform_1, window_bounds = array<i64: 64, 3>}, {pipeline_mode = #tpu.pipeline_mode<synchronous>, transform_indices = @transform_2, window_bounds = array<i64: 64, 1>}, {pipeline_mode = #tpu.pipeline_mode<synchronous>, transform_indices = @transform_3, window_bounds = array<i64: 64, 64>}, {pipeline_mode = #tpu.pipeline_mode<synchronous>, transform_indices = @transform_4, window_bounds = array<i64: 64, 1>}, {pipeline_mode = #tpu.pipeline_mode<synchronous>, transform_indices = @transform_5, window_bounds = array<i64: 64, 1>}, {transform_indices = @transform_6, window_bounds = array<i64: 1>}, {transform_indices = @transform_7, window_bounds = array<i64: 1, 37>}]} {
    %c0 = arith.constant 0 : index
    %c0_0 = arith.constant 0 : index
    %0 = vector.load %arg1[%c0, %c0_0] : memref<3x37xf32, #tpu.memory_space<vmem>>, vector<3x37xf32>
    %c0_1 = arith.constant 0 : index
    %c0_2 = arith.constant 0 : index
    %1 = vector.load %arg2[%c0_1, %c0_2] : memref<64x3xf32, #tpu.memory_space<vmem>>, vector<64x3xf32>
    %2 = vector.extract_strided_slice %1 {offsets = [0, 0], sizes = [64, 1], strides = [1, 1]} : vector<64x3xf32> to vector<64x1xf32>
    %3 = vector.extract_strided_slice %0 {offsets = [0, 0], sizes = [1, 37], strides = [1, 1]} : vector<3x37xf32> to vector<1x37xf32>
    %4 = vector.broadcast %2 : vector<64x1xf32> to vector<64x37xf32>
    %5 = vector.broadcast %3 : vector<1x37xf32> to vector<64x37xf32>
    %6 = arith.mulf %4, %5 : vector<64x37xf32>
    %7 = vector.extract_strided_slice %1 {offsets = [0, 1], sizes = [64, 1], strides = [1, 1]} : vector<64x3xf32> to vector<64x1xf32>
    %8 = vector.extract_strided_slice %0 {offsets = [1, 0], sizes = [1, 37], strides = [1, 1]} : vector<3x37xf32> to vector<1x37xf32>
    %9 = vector.broadcast %7 : vector<64x1xf32> to vector<64x37xf32>
    %10 = vector.broadcast %8 : vector<1x37xf32> to vector<64x37xf32>
    %11 = arith.mulf %9, %10 : vector<64x37xf32>
    %12 = arith.addf %6, %11 : vector<64x37xf32>
    %13 = vector.extract_strided_slice %1 {offsets = [0, 2], sizes = [64, 1], strides = [1, 1]} : vector<64x3xf32> to vector<64x1xf32>
    %14 = vector.extract_strided_slice %0 {offsets = [2, 0], sizes = [1, 37], strides = [1, 1]} : vector<3x37xf32> to vector<1x37xf32>
    %15 = vector.broadcast %13 : vector<64x1xf32> to vector<64x37xf32>
    %16 = vector.broadcast %14 : vector<1x37xf32> to vector<64x37xf32>
    %17 = arith.mulf %15, %16 : vector<64x37xf32>
    %18 = arith.addf %12, %17 : vector<64x37xf32>
    %c0_3 = arith.constant 0 : index
    %c0_4 = arith.constant 0 : index
    %19 = vector.load %arg3[%c0_3, %c0_4] : memref<64x1xf32, #tpu.memory_space<vmem>>, vector<64x1xf32>
    %20 = vector.broadcast %19 : vector<64x1xf32> to vector<64x37xf32>
    %21 = arith.addf %18, %20 : vector<64x37xf32>
    %22 = math.tanh %21 : vector<64x37xf32>
    %c0_5 = arith.constant 0 : index
    %c0_6 = arith.constant 0 : index
    %23 = vector.load %arg4[%c0_5, %c0_6] : memref<64x64xf32, #tpu.memory_space<vmem>>, vector<64x64xf32>
    %cst = arith.constant dense<0.000000e+00> : vector<64x37xf32>
    %24 = tpu.matmul %23, %22, %cst {dimension_numbers = #tpu.dot_dimension_numbers<[1], [0], [0], [1], [0, 0, 1, 1], [], []>} : vector<64x64xf32>, vector<64x37xf32>, vector<64x37xf32> -> vector<64x37xf32>
    %c0_7 = arith.constant 0 : index
    %c0_8 = arith.constant 0 : index
    %25 = vector.load %arg5[%c0_7, %c0_8] : memref<64x1xf32, #tpu.memory_space<vmem>>, vector<64x1xf32>
    %26 = vector.broadcast %25 : vector<64x1xf32> to vector<64x37xf32>
    %27 = arith.addf %24, %26 : vector<64x37xf32>
    %28 = math.tanh %27 : vector<64x37xf32>
    %c0_9 = arith.constant 0 : index
    %c0_10 = arith.constant 0 : index
    %29 = vector.load %arg6[%c0_9, %c0_10] : memref<64x1xf32, #tpu.memory_space<vmem>>, vector<64x1xf32>
    %30 = vector.broadcast %29 : vector<64x1xf32> to vector<64x37xf32>
    %31 = arith.mulf %28, %30 : vector<64x37xf32>
    %cst_11 = arith.constant dense<0.000000e+00> : vector<37xf32>
    %32 = vector.multi_reduction <add>, %31, %cst_11 [0] : vector<64x37xf32> to vector<37xf32>
    %33 = vector.shape_cast %32 : vector<37xf32> to vector<1x37xf32>
    %c0_12 = arith.constant 0 : index
    %34 = memref.load %arg7[%c0_12] : memref<1xf32, #tpu.memory_space<smem>>
    %35 = vector.broadcast %34 : f32 to vector<1x37xf32>
    %36 = arith.addf %33, %35 : vector<1x37xf32>
    %c0_13 = arith.constant 0 : index
    %c0_14 = arith.constant 0 : index
    %37 = vector.load %arg8[%c0_13, %c0_14] : memref<1x37xf32, #tpu.memory_space<vmem>>, vector<1x37xf32>
    tpu.vector_store %arg8[%c0_13, %c0_14], %36 {strides = array<i32>} : memref<1x37xf32, #tpu.memory_space<vmem>>, vector<1x37xf32>,
    return
  }
  func.func @transform_0(%arg0: i32) -> (i32, i32) {
    %c0_i32 = arith.constant 0 : i32
    %c0_i32_0 = arith.constant 0 : i32
    return %c0_i32, %arg0 : i32, i32
  }
  func.func @transform_1(%arg0: i32) -> (i32, i32) {
    %c0_i32 = arith.constant 0 : i32
    %c0_i32_0 = arith.constant 0 : i32
    %c0_i32_1 = arith.constant 0 : i32
    return %c0_i32, %c0_i32_0 : i32, i32
  }
  func.func @transform_2(%arg0: i32) -> (i32, i32) {
    %c0_i32 = arith.constant 0 : i32
    %c0_i32_0 = arith.constant 0 : i32
    %c0_i32_1 = arith.constant 0 : i32
    return %c0_i32, %c0_i32_0 : i32, i32
  }
  func.func @transform_3(%arg0: i32) -> (i32, i32) {
    %c0_i32 = arith.constant 0 : i32
    %c0_i32_0 = arith.constant 0 : i32
    %c0_i32_1 = arith.constant 0 : i32
    return %c0_i32, %c0_i32_0 : i32, i32
  }
  func.func @transform_4(%arg0: i32) -> (i32, i32) {
    %c0_i32 = arith.constant 0 : i32
    %c0_i32_0 = arith.constant 0 : i32
    %c0_i32_1 = arith.constant 0 : i32
    return %c0_i32, %c0_i32_0 : i32, i32
  }
  func.func @transform_5(%arg0: i32) -> (i32, i32) {
    %c0_i32 = arith.constant 0 : i32
    %c0_i32_0 = arith.constant 0 : i32
    %c0_i32_1 = arith.constant 0 : i32
    return %c0_i32, %c0_i32_0 : i32, i32
  }
  func.func @transform_6(%arg0: i32) -> i32 {
    %c0_i32 = arith.constant 0 : i32
    %c0_i32_0 = arith.constant 0 : i32
    return %c0_i32 : i32
  }
  func.func @transform_7(%arg0: i32) -> (i32, i32) {
    %c0_i32 = arith.constant 0 : i32
    %c0_i32_0 = arith.constant 0 : i32
    return %c0_i32, %arg0 : i32, i32
  }
}

</mosaic_0001>

<bundles_post_ra>
// kernel: v_network_forward.1
= control target key start
LH: loop header
LB: loop body
LE: loop exit
PB: predicated region body
PF: predicated region fallthrough
CT: control target
= control target key end

     0   :  { %v585_v3 = vmov 2   ;;  %v586_v4 = vmov 0   ;;  %s832_s0 = inlined_call_operand.vmem [shape: f32[3,37], index: 0, kind: input, shape index: {}]   ;;  %s833_s1 = inlined_call_operand.vmem [shape: f32[64,3], index: 1, kind: input, shape index: {}]   ;;  %s834_s2 = inlined_call_operand.vmem [shape: f32[64,1], index: 2, kind: input, shape index: {}]   ;;  %s835_s3 = inlined_call_operand.vmem [shape: f32[64,64], index: 3, kind: input, shape index: {}]   ;;  %s836_s4 = inlined_call_operand.vmem [shape: f32[64,1], index: 4, kind: input, shape index: {}]   ;;  %s837_s5 = inlined_call_operand.vmem [shape: f32[64,1], index: 5, kind: input, shape index: {}]   ;;  %s838_s6 = inlined_call_operand.<no memory space> [shape: f32[1], index: 6, kind: input, shape index: {}]   ;;  %s839_s7 = inlined_call_operand.hbm [shape: f32[1,37], index: 7, kind: output, shape index: {}]  }
   0x1   :  { %v34_v0 = vld [vmem:[%s833_s1 + $0x28] sm:$0xff]  ;;  %v33_v1 = vld [vmem:[%s833_s1 + $0x20] sm:$0xff]  ;;  %v31_v2 = vld [vmem:[%s833_s1 + $0x10] sm:$0xff]  ;;  %517 = vset.pattern.permute.xlu0 %v585_v3  ;;  %514 = vset.pattern.permute.xlu2 %v586_v4 }
   0x2   :  { %513 = vset.pattern.permute.xlu1 %v586_v4  ;;  %156 = vperm.xlu0 %517, %v34_v0  }
   0x3   :  { %13 = vsyncpa [#allocation4], 0  ;;  %59 = vperm.xlu2 %514, %v33_v1   ;;  %49 = vperm.xlu1 %513, %v31_v2   ;;  %v32_v5 = vld [vmem:[%s833_s1 + $0x18] sm:$0xff]  ;;  %v35_v6 = vld [vmem:[%s833_s1 + $0x30] sm:$0xff]  ;;  %v587_v7 = vmov 1   ;;  %vm304_vm0 = vcmask 523264  }
   0x4   :  { %v36_v8 = vld [vmem:[%s833_s1 + $0x38] sm:$0xff]  ;;  %v29_v9 = vld [vmem:[%s833_s1] sm:$0xff]  ;;  %v30_v10 = vld [vmem:[%s833_s1 + $0x8] sm:$0xff]  ;;  %vm434_vm1 = vcmask 302080   ;;  %s588_s30 = smov [#allocation3]   ;;  %s468_s11 = sshll.u32 %s839_s7, 4  ;;  %s469_s11 = int_to_ptr.hbm [resolvable:$true] %s468_s11 }
   0x5   :  { %v191_v11 = vld [vmem:[%s834_s2 + $0x38] sm:$0xff]  ;;  %v190_v12 = vld [vmem:[%s834_s2 + $0x30] sm:$0xff]  ;;  %v188_v13 = vld [vmem:[%s834_s2 + $0x20] sm:$0xff]  ;;  %s466_s8 = sshll.u32 %s588_s30, 4  ;;  %vm459_vm2 = vcmask 294912   ;;  %s467_s8 = int_to_ptr.vmem [resolvable:$true] %s466_s8 }
   0x6   :  { %v189_v14 = vld [vmem:[%s834_s2 + $0x28] sm:$0xff]  ;;  %v186_v15 = vld [vmem:[%s834_s2 + $0x10] sm:$0xff]  ;;  %v256_v16 = vld [vmem:[%s836_s4] sm:$0xff] }
   0x7   :  { %v259_v17 = vld [vmem:[%s836_s4 + $0x18] sm:$0xff]  ;;  %v378_v18 = vld [vmem:[%s837_s5] sm:$0xff]  ;;  %v380_v20 = vld [vmem:[%s837_s5 + $0x10] sm:$0xff] }
   0x8   :  { %v187_v19 = vld [vmem:[%s834_s2 + $0x18] sm:$0xff]  ;;  %v184_v21 = vld [vmem:[%s834_s2] sm:$0xff]  ;;  %v185_v23 = vld [vmem:[%s834_s2 + $0x8] sm:$0xff] }
   0x9   :  { %v382_v24 = vld [vmem:[%s837_s5 + $0x20] sm:$0xff]  ;;  %v258_v25 = vld [vmem:[%s836_s4 + $0x10] sm:$0xff]  ;;  %v257_v26 = vld [vmem:[%s836_s4 + $0x8] sm:$0xff] }
   0xa   :  { %518 = vset.pattern.permute.xlu0 %v587_v7  ;;  %v385_v28 = vld [vmem:[%s837_s5 + $0x38] sm:$0xff]  ;;  %v261_v29 = vld [vmem:[%s836_s4 + $0x28] sm:$0xff]  ;;  %v260_v30 = vld [vmem:[%s836_s4 + $0x20] sm:$0xff] }
   0xb   :  { %64 = vperm.xlu2 %514, %v34_v0   ;;  %54 = vperm.xlu1 %513, %v32_v5   ;;  %v262_v33 = vld [vmem:[%s836_s4 + $0x30] sm:$0xff]  ;;  %v379_v35 = vld [vmem:[%s837_s5 + $0x8] sm:$0xff]  ;;  %v381_v37 = vld [vmem:[%s837_s5 + $0x18] sm:$0xff] }
   0xc   :  { %111 = vperm.xlu0 %518, %v35_v6   ;;  %v263_v40 = vld [vmem:[%s836_s4 + $0x38] sm:$0xff]  ;;  %v384_v41 = vld [vmem:[%s837_s5 + $0x30] sm:$0xff]  ;;  %v383_v45 = vld [vmem:[%s837_s5 + $0x28] sm:$0xff] }
   0xd   :  { %v28_v49 = vld [vmem:[%s832_s0] sm:$0x7] }
   0xe   :  { %v747_v50 = vperm.slane %v28_v49, 0  ;;  %v749_v51 = vperm.slane %v28_v49, 1  ;;  %v754_v55 = vperm.slane %v28_v49, 2 }
  0x13   :  { %515 = vset.pattern.permute.xlu2 %v587_v7  ;;  %74 = vperm.xlu1 %513, %v36_v8  }
  0x14   :  { %115 = vperm.xlu2 %515, %v36_v8   ;;  %95 = vperm.xlu0 %518, %v31_v2  }
  0x1b   :  { %516 = vset.pattern.permute.xlu1 %v585_v3 }
  0x1c   :  { %107 = vperm.xlu2 %515, %v34_v0   ;;  %522 = vset.pattern.permute.xlu0 %v586_v4 }
  0x1d   :  { %164 = vperm.xlu1 %516, %v36_v8   ;;  %39 = vperm.xlu0 %522, %v29_v9  }
  0x24   :  { %103 = vperm.xlu2 %515, %v33_v1  }
  0x25   :  { %160 = vperm.xlu1 %516, %v35_v6   ;;  %44 = vperm.xlu0 %522, %v30_v10  }
  0x2c   :  { %99 = vperm.xlu2 %515, %v32_v5  }
  0x2d   :  { %519 = vset.pattern.permute.xlu1 %v586_v4  ;;  %69 = vperm.xlu0 %522, %v35_v6  }
  0x2e   :  { %229 = vperm.xlu1 %519, %v191_v11  }
  0x34   :  { %521 = vset.pattern.permute.xlu2 %v586_v4 }
  0x35   :  { %224 = vperm.xlu2 %521, %v190_v12   ;;  %214 = vperm.xlu0 %522, %v188_v13  }
  0x36   :  { %520 = vset.pattern.permute.xlu1 %v585_v3 }
  0x37   :  { %152 = vperm.xlu1 %520, %v33_v1  }
  0x3d   :  { %219 = vperm.xlu2 %521, %v189_v14   ;;  %204 = vperm.xlu0 %522, %v186_v15  }
  0x3f   :  { %148 = vperm.xlu1 %520, %v32_v5  }
  0x45   :  { %524 = vset.pattern.permute.xlu2 %v585_v3  ;;  %266 = vperm.xlu0 %522, %v256_v16  }
  0x46   :  { %144 = vperm.xlu2 %524, %v31_v2  }
  0x47   :  { %523 = vset.pattern.permute.xlu1 %v587_v7 }
  0x48   :  { %91 = vperm.xlu1 %523, %v30_v10  }
  0x4d   :  { %281 = vperm.xlu0 %522, %v259_v17  }
  0x4e   :  { %140 = vperm.xlu2 %524, %v30_v10  }
  0x50   :  { %87 = vperm.xlu1 %523, %v29_v9  }
  0x55   :  { %388 = vperm.xlu0 %522, %v378_v18  }
  0x56   :  { %136 = vperm.xlu2 %524, %v29_v9  }
  0x58   :  { %525 = vset.pattern.permute.xlu1 %v586_v4 }
  0x59   :  { %209 = vperm.xlu1 %525, %v187_v19  }
  0x5d   :  { %398 = vperm.xlu0 %522, %v380_v20   ;;  %v692_v22 = vpop.permute.xlu2 %59 }
  0x5e   :  { %526 = vset.pattern.permute.xlu2 %v586_v4  ;;  %v82_v14 = vmul.f32 %v747_v50, %v692_v22 }
  0x5f   :  { %194 = vperm.xlu2 %526, %v184_v21  }
  0x61   :  { %199 = vperm.xlu1 %525, %v185_v23  }
  0x65   :  { %408 = vperm.xlu0 %522, %v382_v24   ;;  %v65_v27 = vpop.permute.xlu2 %64 }
  0x66   :  { %v83_v59 = vmul.f32 %v747_v50, %v65_v27 }
  0x67   :  { %276 = vperm.xlu2 %526, %v258_v25  }
  0x69   :  { %271 = vperm.xlu1 %525, %v257_v26  }
  0x6d   :  { %423 = vperm.xlu0 %522, %v385_v28  }
  0x6e   :  { %v116_v31 = vpop.permute.xlu2 %115 }
  0x6f   :  { %291 = vperm.xlu2 %526, %v261_v29   ;;  %v126_v54 = vmul.f32 %v749_v51, %v116_v31 }
  0x71   :  { %286 = vperm.xlu1 %525, %v260_v30  }
  0x74   :  { %v157_v32 = vpop.permute.xlu0 %156 }
  0x75   :  { %v719_v34 = vpop.permute.xlu1 %49  ;;  %v173_v2 = vmul.f32 %v754_v55, %v157_v32 }
  0x76   :  { %v108_v36 = vpop.permute.xlu2 %107  ;;  %v80_v32 = vmul.f32 %v747_v50, %v719_v34 }
  0x77   :  { %296 = vperm.xlu2 %526, %v262_v33   ;;  %v124_v60 = vmul.f32 %v749_v51, %v108_v36 }
  0x79   :  { %393 = vperm.xlu1 %525, %v379_v35   ;;  %v132_v3 = vadd.f32 %v124_v60, %v83_v59 }
  0x7b   :  { %v181_v9 = vadd.f32 %v173_v2, %v132_v3  ;;  %v254_v2 = vld [vmem:[%s835_s3 + $0x30] sm:$0xff]  ;;  %v249_v3 = vld [vmem:[%s835_s3 + $0x8] sm:$0xff] }
  0x7d   :  { %v727_v38 = vpop.permute.xlu1 %54 }
  0x7e   :  { %v112_v39 = vpop.permute.xlu0 %111  ;;  %v104_v43 = vpop.permute.xlu2 %103  ;;  %v81_v33 = vmul.f32 %v747_v50, %v727_v38 }
  0x7f   :  { %403 = vperm.xlu2 %526, %v381_v37   ;;  %v125_v62 = vmul.f32 %v749_v51, %v112_v39  ;;  %v123_v11 = vmul.f32 %v749_v51, %v104_v43 }
  0x81   :  { %301 = vperm.xlu1 %525, %v263_v40   ;;  %v131_v17 = vadd.f32 %v123_v11, %v82_v14 }
  0x85   :  { %v75_v42 = vpop.permute.xlu1 %74 }
  0x86   :  { %v735_v44 = vpop.permute.xlu0 %95  ;;  %v740_v47 = vpop.permute.xlu2 %99  ;;  %v85_v56 = vmul.f32 %v747_v50, %v75_v42 }
  0x87   :  { %418 = vperm.xlu2 %526, %v384_v41   ;;  %v122_v30 = vmul.f32 %v749_v51, %v740_v47  ;;  %v121_v31 = vmul.f32 %v749_v51, %v735_v44 }
  0x88   :  { %v134_v61 = vadd.f32 %v126_v54, %v85_v56 }
  0x89   :  { %413 = vperm.xlu1 %525, %v383_v45   ;;  %v130_v37 = vadd.f32 %v122_v30, %v81_v33  ;;  %v129_v39 = vadd.f32 %v121_v31, %v80_v32 }
  0x8f   :  { %v165_v46 = vpop.permute.xlu1 %164  ;;  %v742_v48 = vpop.permute.xlu0 %39 }
  0x90   :  { %v225_v57 = vpop.permute.xlu2 %224  ;;  %v175_v58 = vmul.f32 %v754_v55, %v165_v46  ;;  %v78_v43 = vmul.f32 %v747_v50, %v742_v48 }
  0x92   :  { %v183_v63 = vadd.f32 %v175_v58, %v134_v61 }
  0x97   :  { %v161_v52 = vpop.permute.xlu1 %160  ;;  %v751_v53 = vpop.permute.xlu0 %44 }
  0x98   :  { %v174_v6 = vmul.f32 %v754_v55, %v161_v52  ;;  %v220_v8 = vpop.permute.xlu2 %219  ;;  %v79_v38 = vmul.f32 %v747_v50, %v751_v53 }
  0x99   :  { %v237_v12 = vadd.f32 %v220_v8, %v181_v9 }
  0x9f   :  { %v70_v1 = vpop.permute.xlu0 %69 }
  0xa0   :  { %v230_v0 = vpop.permute.xlu1 %229  ;;  %v84_v5 = vmul.f32 %v747_v50, %v70_v1  ;;  %v145_v25 = vpop.permute.xlu2 %144  ;;  %v252_v1 = vld [vmem:[%s835_s3 + $0x20] sm:$0xff] }
  0xa1   :  { %v239_v4 = vadd.f32 %v230_v0, %v183_v63  ;;  %v170_v35 = vmul.f32 %v754_v55, %v145_v25  ;;  %v248_v63 = vld [vmem:[%s835_s3] sm:$0xff]  ;;  %v250_v0 = vld [vmem:[%s835_s3 + $0x10] sm:$0xff] }
  0xa2   :  { %v133_v7 = vadd.f32 %v125_v62, %v84_v5  ;;  %v253_v5 = vld [vmem:[%s835_s3 + $0x28] sm:$0xff] }
  0xa3   :  { %527 = vtanh.f32 %v239_v4  ;;  %v178_v44 = vadd.f32 %v170_v35, %v129_v39  ;;  %v251_v4 = vld [vmem:[%s835_s3 + $0x18] sm:$0xff] }
  0xa4   :  { %v182_v10 = vadd.f32 %v174_v6, %v133_v7  ;;  %v255_v6 = vld [vmem:[%s835_s3 + $0x38] sm:$0xff] }
  0xa6   :  { %v238_v13 = vadd.f32 %v225_v57, %v182_v10 }
  0xa7   :  { %v215_v20 = vpop.permute.xlu0 %214 }
  0xa8   :  { %529 = vtanh.f32 %v238_v13  ;;  %v141_v28 = vpop.permute.xlu2 %140 }
  0xa9   :  { %v528_v15 = vpop.eup %527  ;;  %v153_v16 = vpop.permute.xlu1 %152  ;;  %531 = vtanh.f32 %v237_v12  ;;  %v169_v54 = vmul.f32 %v754_v55, %v141_v28 }
  0xaa   :  { %v172_v18 = vmul.f32 %v754_v55, %v153_v16  ;;  %337 = vmatpush.msra.mxu0 %v528_v15  ;;  %485 = vmatpush.msra.mxu1 %v528_v15 }
  0xab   :  { %486 = vmatpush.msra.mxu2 %v528_v15  ;;  %487 = vmatpush.msra.mxu3 %v528_v15 }
  0xac   :  { %v180_v19 = vadd.f32 %v172_v18, %v131_v17 }
  0xae   :  { %v236_v21 = vadd.f32 %v215_v20, %v180_v19  ;;  %v530_v23 = vpop.eup %529 }
  0xaf   :  { %338 = vmatpush.msra.mxu0 %v530_v23  ;;  %488 = vmatpush.msra.mxu1 %v530_v23  ;;  %v532_v24 = vpop.eup %531  ;;  %v205_v41 = vpop.permute.xlu0 %204 }
  0xb0   :  { %533 = vtanh.f32 %v236_v21  ;;  %489 = vmatpush.msra.mxu2 %v530_v23  ;;  %490 = vmatpush.msra.mxu3 %v530_v23  ;;  %v137_v42 = vpop.permute.xlu2 %136  ;;  %v234_v47 = vadd.f32 %v205_v41, %v178_v44 }
  0xb1   :  { %v149_v22 = vpop.permute.xlu1 %148  ;;  %339 = vmatpush.msra.mxu0 %v532_v24  ;;  %491 = vmatpush.msra.mxu1 %v532_v24  ;;  %v168_v56 = vmul.f32 %v754_v55, %v137_v42 }
  0xb2   :  { %492 = vmatpush.msra.mxu2 %v532_v24  ;;  %493 = vmatpush.msra.mxu3 %v532_v24  ;;  %v171_v36 = vmul.f32 %v754_v55, %v149_v22 }
  0xb4   :  { %v179_v34 = vadd.f32 %v171_v36, %v130_v37 }
  0xb6   :  { %v534_v26 = vpop.eup %533 }
  0xb7   :  { %340 = vmatpush.msra.mxu0 %v534_v26  ;;  %494 = vmatpush.msra.mxu1 %v534_v26  ;;  %v267_v7 = vpop.permute.xlu0 %266 }
  0xb8   :  { %495 = vmatpush.msra.mxu2 %v534_v26  ;;  %496 = vmatpush.msra.mxu3 %v534_v26 }
  0xb9   :  { %v195_v59 = vpop.permute.xlu2 %194 }
  0xba   :  { %v92_v27 = vpop.permute.xlu1 %91 }
  0xbb   :  { %v120_v45 = vmul.f32 %v749_v51, %v92_v27 }
  0xbd   :  { %v128_v57 = vadd.f32 %v120_v45, %v79_v38 }
  0xbf   :  { %v177_v48 = vadd.f32 %v169_v54, %v128_v57  ;;  %v282_v9 = vpop.permute.xlu0 %281 }
  0xc1   :  { %v277_v10 = vpop.permute.xlu2 %276 }
  0xc2   :  { %v88_v29 = vpop.permute.xlu1 %87 }
  0xc3   :  { %v119_v40 = vmul.f32 %v749_v51, %v88_v29 }
  0xc5   :  { %v127_v49 = vadd.f32 %v119_v40, %v78_v43 }
  0xc7   :  { %v176_v58 = vadd.f32 %v168_v56, %v127_v49  ;;  %v389_v12 = vpop.permute.xlu0 %388 }
  0xc9   :  { %v232_v61 = vadd.f32 %v195_v59, %v176_v58  ;;  %v292_v13 = vpop.permute.xlu2 %291 }
  0xcb   :  { %v210_v46 = vpop.permute.xlu1 %209 }
  0xcc   :  { %v235_v52 = vadd.f32 %v210_v46, %v179_v34 }
  0xce   :  { %535 = vtanh.f32 %v235_v52 }
  0xcf   :  { %537 = vtanh.f32 %v234_v47  ;;  %v399_v18 = vpop.permute.xlu0 %398 }
  0xd1   :  { %v297_v19 = vpop.permute.xlu2 %296 }
  0xd3   :  { %v200_v60 = vpop.permute.xlu1 %199 }
  0xd4   :  { %v536_v51 = vpop.eup %535  ;;  %v233_v62 = vadd.f32 %v200_v60, %v177_v48 }
  0xd5   :  { %341 = vmatpush.msra.mxu0 %v536_v51  ;;  %497 = vmatpush.msra.mxu1 %v536_v51  ;;  %v538_v50 = vpop.eup %537 }
  0xd6   :  { %539 = vtanh.f32 %v233_v62  ;;  %498 = vmatpush.msra.mxu2 %v536_v51  ;;  %499 = vmatpush.msra.mxu3 %v536_v51 }
  0xd7   :  { %342 = vmatpush.msra.mxu0 %v538_v50  ;;  %500 = vmatpush.msra.mxu1 %v538_v50  ;;  %541 = vtanh.f32 %v232_v61  ;;  %v409_v41 = vpop.permute.xlu0 %408 }
  0xd8   :  { %501 = vmatpush.msra.mxu2 %v538_v50  ;;  %502 = vmatpush.msra.mxu3 %v538_v50 }
  0xd9   :  { %v404_v35 = vpop.permute.xlu2 %403 }
  0xdb   :  { %v272_v8 = vpop.permute.xlu1 %271 }
  0xdc   :  { %v540_v53 = vpop.eup %539 }
  0xdd   :  { %343 = vmatpush.msra.mxu0 %v540_v53  ;;  %503 = vmatpush.msra.mxu1 %v540_v53  ;;  %v542_v55 = vpop.eup %541 }
  0xde   :  { %504 = vmatpush.msra.mxu2 %v540_v53  ;;  %505 = vmatpush.msra.mxu3 %v540_v53 }
  0xdf   :  { %344 = vmatpush.msra.mxu0 %v542_v55  ;;  %506 = vmatpush.msra.mxu1 %v542_v55  ;;  %v424_v53 = vpop.permute.xlu0 %423 }
  0xe0   :  { %507 = vmatpush.msra.mxu2 %v542_v55  ;;  %508 = vmatpush.msra.mxu3 %v542_v55 }
  0xe1   :  { %477 = vmatmul.msk.f32.vlgmr.msra.gmra.mxu0 %vm304_vm0, %v248_v63  ;;  %479 = vmatmul.msk.f32.vlgmr.msra.gmra.mxu1 %vm304_vm0, %v250_v0  ;;  %v419_v51 = vpop.permute.xlu2 %418 }
  0xe2   :  { %481 = vmatmul.msk.f32.vlgmr.msra.gmra.mxu2 %vm304_vm0, %v252_v1  ;;  %483 = vmatmul.msk.f32.vlgmr.msra.gmra.mxu3 %vm304_vm0, %v254_v2 }
  0xe3   :  { %v287_v11 = vpop.permute.xlu1 %286 }
  0xe9   :  { %478 = vmatmul.msk.f32.gmra.mxu0 %vm304_vm0, %v249_v3  ;;  %480 = vmatmul.msk.f32.gmra.mxu1 %vm304_vm0, %v251_v4 }
  0xea   :  { %482 = vmatmul.msk.f32.gmra.mxu2 %vm304_vm0, %v253_v5  ;;  %484 = vmatmul.msk.f32.gmra.mxu3 %vm304_vm0, %v255_v6 }
  0xeb   :  { %v394_v16 = vpop.permute.xlu1 %393 }
  0xf3   :  { %v302_v30 = vpop.permute.xlu1 %301 }
  0xfb   :  { %v414_v57 = vpop.permute.xlu1 %413 }
 0x15e   :  { %v346_v14 = vpop.f32.mrf.mxu0  ;;  %v352_v15 = vpop.f32.mrf.mxu1 }
 0x15f   :  { %v347_v17 = vadd.f32 %v346_v14, %v267_v7  ;;  %v353_v20 = vadd.f32 %v352_v15, %v277_v10 }
 0x161   :  { %543 = vtanh.f32 %v347_v17 }
 0x162   :  { %545 = vtanh.f32 %v353_v20 }
 0x165   :  { %v358_v21 = vpop.f32.mrf.mxu2  ;;  %v364_v23 = vpop.f32.mrf.mxu3 }
 0x166   :  { %v349_v24 = vpop.f32.mrf.mxu0  ;;  %v355_v22 = vpop.f32.mrf.mxu1  ;;  %v359_v27 = vadd.f32 %v358_v21, %v287_v11  ;;  %v365_v28 = vadd.f32 %v364_v23, %v297_v19  ;;  %v457_v11 = vstv %s838_s6 }
 0x167   :  { %v350_v25 = vadd.f32 %v349_v24, %v272_v8  ;;  %v356_v26 = vadd.f32 %v355_v22, %v282_v9  ;;  %v544_v29 = vpop.eup %543 }
 0x168   :  { %v546_v33 = vpop.eup %545  ;;  %v426_v39 = vmul.f32 %v544_v29, %v389_v12 }
 0x169   :  { %547 = vtanh.f32 %v350_v25  ;;  %v428_v43 = vmul.f32 %v546_v33, %v399_v18 }
 0x16a   :  { %549 = vtanh.f32 %v356_v26  ;;  %v435_v34 = vsel %vm434_vm1, %v426_v39, 0.0 }
 0x16b   :  { %551 = vtanh.f32 %v359_v27  ;;  %v438_v52 = vsel %vm434_vm1, %v428_v43, 0.0 }
 0x16c   :  { %553 = vtanh.f32 %v365_v28 }
 0x16d   :  { %v361_v31 = vpop.f32.mrf.mxu2  ;;  %v367_v32 = vpop.f32.mrf.mxu3 }
 0x16e   :  { %v362_v36 = vadd.f32 %v361_v31, %v292_v13  ;;  %v368_v37 = vadd.f32 %v367_v32, %v302_v30 }
 0x16f   :  { %v548_v40 = vpop.eup %547 }
 0x170   :  { %555 = vtanh.f32 %v362_v36  ;;  %v550_v42 = vpop.eup %549  ;;  %v427_v44 = vmul.f32 %v548_v40, %v394_v16 }
 0x171   :  { %v552_v45 = vpop.eup %551  ;;  %557 = vtanh.f32 %v368_v37  ;;  %v429_v38 = vmul.f32 %v550_v42, %v404_v35 }
 0x172   :  { %v436_v46 = vsel %vm434_vm1, %v427_v44, 0.0  ;;  %v554_v49 = vpop.eup %553  ;;  %v430_v54 = vmul.f32 %v552_v45, %v409_v41 }
 0x173   :  { %v437_v47 = vadd.f32 %v436_v46, %v435_v34  ;;  %v440_v48 = vsel %vm434_vm1, %v429_v38, 0.0  ;;  %v432_v50 = vmul.f32 %v554_v49, %v419_v51 }
 0x174   :  { %v442_v62 = vsel %vm434_vm1, %v430_v54, 0.0 }
 0x175   :  { %v439_v58 = vadd.f32 %v438_v52, %v437_v47  ;;  %v446_v2 = vsel %vm434_vm1, %v432_v50, 0.0 }
 0x176   :  { %v556_v56 = vpop.eup %555 }
 0x177   :  { %v431_v59 = vmul.f32 %v556_v56, %v414_v57  ;;  %v558_v60 = vpop.eup %557  ;;  %v441_v61 = vadd.f32 %v440_v48, %v439_v58 }
 0x178   :  { %v433_v0 = vmul.f32 %v558_v60, %v424_v53 }
 0x179   :  { %v443_v55 = vadd.f32 %v442_v62, %v441_v61  ;;  %v444_v63 = vsel %vm434_vm1, %v431_v59, 0.0 }
 0x17a   :  { %v448_v4 = vsel %vm434_vm1, %v433_v0, 0.0 }
 0x17b   :  { %v445_v1 = vadd.f32 %v444_v63, %v443_v55 }
 0x17d   :  { %v447_v3 = vadd.f32 %v446_v2, %v445_v1 }
 0x17f   :  { %v449_v5 = vadd.f32 %v448_v4, %v447_v3 }
 0x181   :  { %v450_v6 = vrot.slane %v449_v5, 4 }
 0x183   :  { %v451_v7 = vadd.f32 %v450_v6, %v449_v5 }
 0x185   :  { %v452_v8 = vrot.slane %v451_v7, 2 }
 0x187   :  { %v453_v9 = vadd.f32 %v452_v8, %v451_v7 }
 0x189   :  { %v454_v10 = vrot.slane %v453_v9, 1 }
 0x18b   :  { %v455_v12 = vadd.f32 %v454_v10, %v453_v9 }
 0x18d   :  { %v458_v13 = vadd.f32 %v457_v11, %v455_v12 }
 0x18f   :  { %460 = vst.msk [vmem:[#allocation3] sm:$0x1] %vm459_vm2, %v458_v13 }
 0x190   :  { %471 = dma.vmem_to_hbm [thread:$0]  %s467_s8, 16, %s469_s11, [#allocation4]  }
 0x191   :  { %583 = dma.done.wait [#allocation4], 16  }
 0x192   :  { %584 = vsyncadd [#allocation4], 4294967280 }
 0x193   :  { %476 = vsyncpa [#allocation4], 1 }

</bundles_post_ra>
